<compile_context>
chip_gen: v6e
topology: v6e:2x2x1
jax: 0.10.0
libtpu: 0.0.40
codegen_flags: <defaults>
</compile_context>

<pallas_src>
import functools

import jax
import jax.numpy as jnp
from jax import lax
from jax.experimental import pallas as pl
from jax.experimental.pallas import tpu as pltpu


# ---------------------------------------------------------------------------
# Fused kernel: unified conv (all 8 branches) + bias + ReLU + width-maxpool
#               + channel L2 normalization, B batch elements per grid step.
# ---------------------------------------------------------------------------
def fused_inp_layer2_kernel(g_ref, w_ref, b_ref, o_ref, *, KW, out_max):
    # g_ref : (B, KH*C_in, H*Wp)      bf16, height taps pre-expanded on host
    # w_ref : (C_total, KW*KH*C_in)   bf16, unified im2col weights (dw, dh, ci)
    # b_ref : (C_total, 1)            f32
    # o_ref : (B, C_total, H*Wp)      stride-Wp slab; valid cols sliced in wrapper
    B, KC, L1 = g_ref.shape
    C_total = w_ref.shape[0]
    Lc = L1 - (KW - 1)                      # conv-valid flattened columns / element

    # im2col RHS (KW*KC, B*Lc): width taps folded along sublanes (KC-row chunks,
    # 8-sublane aligned), batch elements folded along lanes.
    gs = [g_ref[b] for b in range(B)]       # each (KC, L1) bf16
    rows = []
    for dw in range(KW):
        if B == 1:
            rows.append(gs[0][:, dw:dw + Lc])
        else:
            rows.append(jnp.concatenate([g[:, dw:dw + Lc] for g in gs], axis=1))
    GG = jnp.concatenate(rows, axis=0)      # (KW*KC, B*Lc) bf16

    # One MXU matmul for all branches / taps / batch elements of this step.
    acc = jnp.dot(w_ref[...], GG, preferred_element_type=jnp.float32)
    y = jnp.maximum(acc + b_ref[...], 0.0)  # bias + ReLU, f32, (C_total, B*Lc)

    # MaxPool over width (window out_max, stride 1) as a log-depth shift tree.
    # Valid pooling windows never cross a row / batch-element boundary because
    # W_pool + (KW-1) + (out_max-1) == Wp (asserted in the wrapper).
    m = y
    covered = 1
    while covered < out_max:
        step = min(covered, out_max - covered)
        m = jnp.maximum(m[:, :m.shape[1] - step], m[:, step:])
        covered += step                     # m[:, c] = max(y[:, c:c+covered])

    # L2 normalization over channels (F.normalize: x / max(||x||, 1e-12)),
    # exact rsqrt (no approx-reciprocal error).
    ss = jnp.sum(m * m, axis=0, keepdims=True)
    mn = (m * lax.rsqrt(jnp.maximum(ss, 1e-24))).astype(o_ref.dtype)

    # One lane-dense (C_total, L1) store per batch element.
    Wm = mn.shape[1]
    for b in range(B):
        start = b * Lc
        end = min(start + Lc, Wm)
        slab = mn[:, start:end]
        pad_w = L1 - (end - start)
        if pad_w:
            slab = jnp.concatenate(
                [slab, jnp.zeros((C_total, pad_w), slab.dtype)], axis=1)
        o_ref[b] = slab


# ---------------------------------------------------------------------------
# One-time host-side packing of the 8 branches into unified im2col weights.
# ---------------------------------------------------------------------------
def pack_params(params):
    C_out, C_in, KH, _ = params[0][0].shape
    KW_max = max(w.shape[3] for (w, _) in params)
    C_total = len(params) * C_out
    pad_l_max = (KW_max - 1) // 2

    U = jnp.zeros((C_total, C_in, KH, KW_max), jnp.float32)
    biases = []
    for i, (w, b) in enumerate(params):
        kw = w.shape[3]
        # Width offset preserving each branch's PyTorch 'same' alignment.
        off = pad_l_max - (kw - 1) // 2
        U = U.at[i * C_out:(i + 1) * C_out, :, :, off:off + kw].set(
            w.astype(jnp.float32))
        biases.append(b.astype(jnp.float32))
    # (co, ci, dh, dw) -> (co, dw, dh, ci) -> (co, KW*KH*C_in): matches GG rows.
    WW = jnp.transpose(U, (0, 3, 2, 1)).reshape(C_total, KW_max * KH * C_in)
    bb = jnp.concatenate(biases).reshape(C_total, 1)
    return WW.astype(jnp.bfloat16), bb


@functools.partial(jax.jit, static_argnames=("in_dim", "out_max", "num_steps"))
def inp_layer2_forward(x, WW, bb, *, in_dim, out_max, num_steps=2):
    N, C_in, H, W = x.shape
    KH = in_dim
    C_total = WW.shape[0]
    KW = WW.shape[1] // (KH * C_in)
    W_pool = W - out_max + 1
    Wp = W + KW - 1
    L1 = H * Wp
    # Garbage columns (row wrap-around / pool-over-the-edge) are computed but
    # never read by the wrapper slice; this invariant guarantees it:
    assert W_pool + (KW - 1) + (out_max - 1) == Wp and W_pool >= 1

    # v7x has 2 TensorCores: keep >= 2 "parallel" grid steps when N allows it;
    # single-TC v5e/v6e only pay one extra ~0.35us step. Extra batch elements
    # beyond num_steps are folded into the lane dim of each step's matmul.
    steps = max(1, min(num_steps, N))
    B = -(-N // steps)                    # batch elements per grid step
    N_pad = steps * B

    pad_t = (KH - 1) // 2
    pad_b = (KH - 1) - pad_t
    pad_l = (KW - 1) // 2
    pad_r = (KW - 1) - pad_l

    # Pad + pre-expand height taps + flatten + bf16 cast (one fused XLA copy):
    # G[n, dh*C_in + ci, h*Wp + w] = xpad[n, ci, h + dh, w].
    xpad = jnp.pad(x.astype(jnp.float32),
                   ((0, N_pad - N), (0, 0), (pad_t, pad_b), (pad_l, pad_r)))
    G = jnp.concatenate([xpad[:, :, dh:dh + H, :] for dh in range(KH)], axis=1)
    G = G.reshape(N_pad, KH * C_in, L1).astype(jnp.bfloat16)

    kernel = functools.partial(fused_inp_layer2_kernel, KW=KW, out_max=out_max)
    out = pl.pallas_call(
        kernel,
        out_shape=jax.ShapeDtypeStruct((N_pad, C_total, L1), x.dtype),
        grid=(steps,),
        in_specs=[
            pl.BlockSpec((B, KH * C_in, L1), lambda s: (s, 0, 0)),
            pl.BlockSpec((C_total, KW * KH * C_in), lambda s: (0, 0)),
            pl.BlockSpec((C_total, 1), lambda s: (0, 0)),
        ],
        out_specs=pl.BlockSpec((B, C_total, L1), lambda s: (s, 0, 0)),
        compiler_params=pltpu.CompilerParams(
            dimension_semantics=("parallel",)),
    )(G, WW, bb)

    # Stride-Wp slab -> NCHW; drop batch padding and garbage columns.
    return out.reshape(N_pad, C_total, H, Wp)[:N, :, :, :W_pool]


# ---------------------------------------------------------------------------
# Parameter init (PyTorch Conv2d-shaped, OIHW) and pure-JAX reference.
# ---------------------------------------------------------------------------
def init_params(key, in_ch, out_ch, in_dim):
    params = []
    for i, kw in enumerate(range(2, 10)):
        kwkey, kbkey = jax.random.split(jax.random.fold_in(key, i))
        fan_in = in_ch * in_dim * kw
        bound = 1.0 / jnp.sqrt(jnp.float32(fan_in))
        w = jax.random.uniform(kwkey, (out_ch, in_ch, in_dim, kw),
                               jnp.float32, -bound, bound)
        b = jax.random.uniform(kbkey, (out_ch,), jnp.float32, -bound, bound)
        params.append((w, b))
    return params


def reference_forward(x, params, out_max):
    outs = []
    for (w, b) in params:
        KH, KW = w.shape[2], w.shape[3]
        pad_t = (KH - 1) // 2
        pad_b = (KH - 1) - pad_t
        pad_l = (KW - 1) // 2
        pad_r = (KW - 1) - pad_l
        y = lax.conv_general_dilated(
            x, w, window_strides=(1, 1),
            padding=[(pad_t, pad_b), (pad_l, pad_r)],
            dimension_numbers=("NCHW", "OIHW", "NCHW"))
        y = y + b.reshape(1, -1, 1, 1)
        y = jnp.maximum(y, 0.0)
        y = lax.reduce_window(y, -jnp.inf, lax.max,
                              (1, 1, 1, out_max), (1, 1, 1, 1), "VALID")
        outs.append(y)
    cat = jnp.concatenate(outs, axis=1)
    norm = jnp.sqrt(jnp.sum(cat * cat, axis=1, keepdims=True))
    return cat / jnp.maximum(norm, 1e-12)


if __name__ == "__main__":
    N, in_ch, out_ch = 2, 4, 4
    in_dim = 8                 # conv kernel height; input height == in_dim
    H, W = in_dim, 16
    out_max = 4                # maxpool width window

    key = jax.random.PRNGKey(0)
    xkey, pkey = jax.random.split(key)
    x = jax.random.normal(xkey, (N, in_ch, H, W), jnp.float32)
    params = init_params(pkey, in_ch, out_ch, in_dim)

    WW, bb = pack_params(params)       # once, outside the jitted forward

    out = inp_layer2_forward(x, WW, bb, in_dim=in_dim, out_max=out_max)
    out = jax.block_until_ready(out)

    ref = reference_forward(x, params, out_max)
    assert out.shape == (N, 8 * out_ch, H, W - out_max + 1), out.shape
    # Both the kernel and the XLA reference run their convs on the MXU at
    # bf16 operand precision (TPU default precision); the kernel additionally
    # feeds explicit bf16 im2col operands, so allow bf16-level deviation.
    assert jnp.allclose(out, ref, atol=2e-2, rtol=2e-2), \
        float(jnp.max(jnp.abs(out - ref)))

    print("KERNEL_OK")
</pallas_src>

<mosaic_0001>
module attributes {stable_mosaic.version = 11 : i64} {
  func.func @fused_inp_layer2_kernel(%arg0: i32, %arg1: memref<1x32x192xbf16, #tpu.memory_space<vmem>>, %arg2: memref<32x288xbf16, #tpu.memory_space<vmem>>, %arg3: memref<32x1xf32, #tpu.memory_space<vmem>>, %arg4: memref<1x32x192xf32, #tpu.memory_space<vmem>>) attributes {dimension_semantics = [#tpu.dimension_semantics<parallel>], iteration_bounds = array<i64: 2>, scalar_prefetch = 0 : i64, scratch_operands = 0 : i64, tpu.core_type = #tpu.core_type<tc>, window_params = [{transform_indices = @transform_0, window_bounds = array<i64: 1, 32, 192>}, {pipeline_mode = #tpu.pipeline_mode<synchronous>, transform_indices = @transform_1, window_bounds = array<i64: 32, 288>}, {pipeline_mode = #tpu.pipeline_mode<synchronous>, transform_indices = @transform_2, window_bounds = array<i64: 32, 1>}, {transform_indices = @transform_3, window_bounds = array<i64: 1, 32, 192>}]} {
    %c0 = arith.constant 0 : index
    %c0_0 = arith.constant 0 : index
    %c0_1 = arith.constant 0 : index
    %0 = vector.load %arg1[%c0, %c0_0, %c0_1] : memref<1x32x192xbf16, #tpu.memory_space<vmem>>, vector<1x32x192xbf16>
    %1 = vector.shape_cast %0 : vector<1x32x192xbf16> to vector<32x192xbf16>
    %2 = vector.extract_strided_slice %1 {offsets = [0, 0], sizes = [32, 184], strides = [1, 1]} : vector<32x192xbf16> to vector<32x184xbf16>
    %3 = vector.extract_strided_slice %1 {offsets = [0, 1], sizes = [32, 184], strides = [1, 1]} : vector<32x192xbf16> to vector<32x184xbf16>
    %4 = vector.extract_strided_slice %1 {offsets = [0, 2], sizes = [32, 184], strides = [1, 1]} : vector<32x192xbf16> to vector<32x184xbf16>
    %5 = vector.extract_strided_slice %1 {offsets = [0, 3], sizes = [32, 184], strides = [1, 1]} : vector<32x192xbf16> to vector<32x184xbf16>
    %6 = vector.extract_strided_slice %1 {offsets = [0, 4], sizes = [32, 184], strides = [1, 1]} : vector<32x192xbf16> to vector<32x184xbf16>
    %7 = vector.extract_strided_slice %1 {offsets = [0, 5], sizes = [32, 184], strides = [1, 1]} : vector<32x192xbf16> to vector<32x184xbf16>
    %8 = vector.extract_strided_slice %1 {offsets = [0, 6], sizes = [32, 184], strides = [1, 1]} : vector<32x192xbf16> to vector<32x184xbf16>
    %9 = vector.extract_strided_slice %1 {offsets = [0, 7], sizes = [32, 184], strides = [1, 1]} : vector<32x192xbf16> to vector<32x184xbf16>
    %10 = vector.extract_strided_slice %1 {offsets = [0, 8], sizes = [32, 184], strides = [1, 1]} : vector<32x192xbf16> to vector<32x184xbf16>
    %11 = tpu.concatenate %2, %3, %4, %5, %6, %7, %8, %9, %10 in 0 : vector<32x184xbf16>, vector<32x184xbf16>, vector<32x184xbf16>, vector<32x184xbf16>, vector<32x184xbf16>, vector<32x184xbf16>, vector<32x184xbf16>, vector<32x184xbf16>, vector<32x184xbf16> -> vector<288x184xbf16>
    %c0_2 = arith.constant 0 : index
    %c0_3 = arith.constant 0 : index
    %12 = vector.load %arg2[%c0_2, %c0_3] : memref<32x288xbf16, #tpu.memory_space<vmem>>, vector<32x288xbf16>
    %cst = arith.constant dense<0.000000e+00> : vector<32x184xf32>
    %13 = tpu.matmul %12, %11, %cst {dimension_numbers = #tpu.dot_dimension_numbers<[1], [0], [0], [1], [0, 0, 1, 1], [], []>} : vector<32x288xbf16>, vector<288x184xbf16>, vector<32x184xf32> -> vector<32x184xf32>
    %c0_4 = arith.constant 0 : index
    %c0_5 = arith.constant 0 : index
    %14 = vector.load %arg3[%c0_4, %c0_5] : memref<32x1xf32, #tpu.memory_space<vmem>>, vector<32x1xf32>
    %15 = vector.broadcast %14 : vector<32x1xf32> to vector<32x184xf32>
    %16 = arith.addf %13, %15 : vector<32x184xf32>
    %cst_6 = arith.constant 0.000000e+00 : f32
    %17 = vector.broadcast %cst_6 : f32 to vector<32x184xf32>
    %18 = arith.maximumf %16, %17 : vector<32x184xf32>
    %19 = vector.extract_strided_slice %18 {offsets = [0, 0], sizes = [32, 183], strides = [1, 1]} : vector<32x184xf32> to vector<32x183xf32>
    %20 = vector.extract_strided_slice %18 {offsets = [0, 1], sizes = [32, 183], strides = [1, 1]} : vector<32x184xf32> to vector<32x183xf32>
    %21 = arith.maximumf %19, %20 : vector<32x183xf32>
    %22 = vector.extract_strided_slice %21 {offsets = [0, 0], sizes = [32, 181], strides = [1, 1]} : vector<32x183xf32> to vector<32x181xf32>
    %23 = vector.extract_strided_slice %21 {offsets = [0, 2], sizes = [32, 181], strides = [1, 1]} : vector<32x183xf32> to vector<32x181xf32>
    %24 = arith.maximumf %22, %23 : vector<32x181xf32>
    %25 = arith.mulf %24, %24 : vector<32x181xf32>
    %cst_7 = arith.constant dense<0.000000e+00> : vector<181xf32>
    %26 = vector.multi_reduction <add>, %25, %cst_7 [0] : vector<32x181xf32> to vector<181xf32>
    %27 = vector.shape_cast %26 : vector<181xf32> to vector<1x181xf32>
    %cst_8 = arith.constant 1.000000e-24 : f32
    %28 = vector.broadcast %cst_8 : f32 to vector<1x181xf32>
    %29 = arith.maximumf %27, %28 : vector<1x181xf32>
    %30 = math.rsqrt %29 : vector<1x181xf32>
    %31 = vector.broadcast %30 : vector<1x181xf32> to vector<32x181xf32>
    %32 = arith.mulf %24, %31 : vector<32x181xf32>
    %cst_9 = arith.constant 0.000000e+00 : f32
    %33 = vector.broadcast %cst_9 : f32 to vector<32x11xf32>
    %34 = tpu.concatenate %32, %33 in 1 : vector<32x181xf32>, vector<32x11xf32> -> vector<32x192xf32>
    %c0_10 = arith.constant 0 : index
    %c0_11 = arith.constant 0 : index
    %c0_12 = arith.constant 0 : index
    %35 = vector.load %arg4[%c0_10, %c0_11, %c0_12] : memref<1x32x192xf32, #tpu.memory_space<vmem>>, vector<1x32x192xf32>
    %36 = vector.shape_cast %35 : vector<1x32x192xf32> to vector<32x192xf32>
    %37 = vector.shape_cast %34 : vector<32x192xf32> to vector<1x32x192xf32>
    tpu.vector_store %arg4[%c0_10, %c0_11, %c0_12], %37 {strides = array<i32>} : memref<1x32x192xf32, #tpu.memory_space<vmem>>, vector<1x32x192xf32>,
    return
  }
  func.func @transform_0(%arg0: i32) -> (i32, i32, i32) {
    %c0_i32 = arith.constant 0 : i32
    %c0_i32_0 = arith.constant 0 : i32
    %c0_i32_1 = arith.constant 0 : i32
    return %arg0, %c0_i32, %c0_i32_0 : i32, i32, i32
  }
  func.func @transform_1(%arg0: i32) -> (i32, i32) {
    %c0_i32 = arith.constant 0 : i32
    %c0_i32_0 = arith.constant 0 : i32
    %c0_i32_1 = arith.constant 0 : i32
    return %c0_i32, %c0_i32_0 : i32, i32
  }
  func.func @transform_2(%arg0: i32) -> (i32, i32) {
    %c0_i32 = arith.constant 0 : i32
    %c0_i32_0 = arith.constant 0 : i32
    %c0_i32_1 = arith.constant 0 : i32
    return %c0_i32, %c0_i32_0 : i32, i32
  }
  func.func @transform_3(%arg0: i32) -> (i32, i32, i32) {
    %c0_i32 = arith.constant 0 : i32
    %c0_i32_0 = arith.constant 0 : i32
    %c0_i32_1 = arith.constant 0 : i32
    return %arg0, %c0_i32, %c0_i32_0 : i32, i32, i32
  }
}

</mosaic_0001>

<bundles_post_ra>
// kernel: inp_layer2_forward.1
= control target key start
LH: loop header
LB: loop body
LE: loop exit
PB: predicated region body
PF: predicated region fallthrough
CT: control target
= control target key end

     0   :  { %s799_s12 = smov 0   ;;  %s944_s0 = inlined_call_operand.vmem [shape: bf16[2,32,192], index: 0, kind: input, shape index: {}]   ;;  %s945_s1 = inlined_call_operand.vmem [shape: bf16[32,288], index: 1, kind: input, shape index: {}]   ;;  %s946_s2 = inlined_call_operand.vmem [shape: f32[32,1], index: 2, kind: input, shape index: {}]   ;;  %s947_s3 = inlined_call_operand.vmem [shape: f32[2,32,192], index: 3, kind: output, shape index: {}]  }
   0x1 LB: > { %s700_s13 = sadd.s32 4294967295, %s768_s12   ;;  %p704_p0 = scmp.ge.s32.totalorder %s768_s12, 1  ;;  %s768_s12 = sphi %s799_s12, %s13_s12  }
   0x2   : > { %p137_p1 = scmp.lt.s32.totalorder %s768_s12, 3 }
   0x4   : > { %p138_p2 = pnand %p704_p0, %p137_p1 }
   0x5   : > { %p161_p3 = scmp.lt.s32.totalorder (!%p138_p2), %s700_s13, 1  ;;  %s770_s18 = smov (!%p138_p2), 125  }
   0x6   : > { %141 = sbr.rel (%p138_p2) target bundleno = 686 (0x2ae), region = 32  ;;  %s771_s19 = smov (!%p138_p2), 126  }
   0x7   : > { %s772_s20 = smov (!%p138_p2), 127   ;;  %s773_s21 = smov (!%p138_p2), 121  }
   0x8   : > { %s774_s22 = smov (!%p138_p2), 122   ;;  %s775_s23 = smov (!%p138_p2), 123  }
   0x9   : > { %s776_s24 = smov (!%p138_p2), 124   ;;  %s778_s25 = smov (!%p138_p2), 120  }
   0xb   : > { %s949_s13 = smov (!%p161_p3, %s700_s13), 1  ;;  %v777_v4 = vmov 0   ;;  %v753_v5 = vld [vmem:[%s945_s1 + $0x4] ss:$12 sps:$4 sm:$0xff]   ;;  %v325_v7 = vld [vmem:[%s946_s2 + $0x8] sm:$0xff]  ;;  %v327_v8 = vld [vmem:[%s946_s2 + $0x18] sm:$0xff] }
   0xc   : > { %s723_s14 = sshll.u32 %s949_s13, 5  ;;  %470 = vmatprep.mubr.bf16.mxu1 %v777_v4  ;;  %742 = vset.pattern.permute.xlu0 %v777_v4  ;;  %v324_v6 = vld [vmem:[%s946_s2] sm:$0xff]  ;;  %v326_v9 = vld [vmem:[%s946_s2 + $0x10] sm:$0xff]  ;;  %vm234_vm0 = vcmask 1022976   ;;  %vm219_vm1 = vcmask 1031168   ;;  %vm204_vm2 = vcmask 1039360  }
   0xd   : > { %s165_s17 = scalar_lea.vmem %s944_s0, %s723_s14  ;;  %743 = vset.pattern.permute.xlu1 %v777_v4  ;;  %417 = vmatprep.mubr.bf16.mxu0 %v753_v5  ;;  %vm294_vm3 = vcmask 990208   ;;  %vm279_vm4 = vcmask 998400   ;;  %vm264_vm5 = vcmask 1006592   ;;  %vm309_vm6 = vcmask 982016   ;;  %v750_v57 = vld [vmem:[%s945_s1 + $0x8] ss:$12 sps:$4 sm:$0xff]  }
   0xe   : > { %v813_v0 = vld [vmem:[%s165_s17 + $0x10] ss:$8 sps:$4 sm:$0xff]   ;;  %v815_v1 = vld [vmem:[%s165_s17] ss:$8 sps:$4 sm:$0xff]   ;;  %v818_v2 = vld [vmem:[%s165_s17 + $0x14] ss:$8 sps:$4 sm:$0xff]  }
   0xf   : > { %230 = vrot.lane.b32.xlu0 %v813_v0, %s770_s18  ;;  %226 = vrot.lane.b32.xlu1 %v815_v1, %s770_s18  ;;  %v821_v3 = vld [vmem:[%s165_s17 + $0x4] ss:$8 sps:$4 sm:$0xff]   ;;  %vm249_vm7 = vcmask 1014784   ;;  %vm378_vm8 = vcmask 261120   ;;  %v754_v60 = vld [vmem:[%s945_s1 + $0x1c] ss:$12 sps:$4 sm:$0xff]  }
  0x10   : > { %v751_v59 = vld [vmem:[%s945_s1] ss:$12 sps:$4 sm:$0xff]   ;;  %v757_v62 = vld [vmem:[%s945_s1 + $0x18] ss:$12 sps:$4 sm:$0xff]   ;;  %vm606_vm9 = vcmask 433152   ;;  %vm637_vm10 = vcmask 523264  }
  0x11   : > { %v756_v61 = vld [vmem:[%s945_s1 + $0x20] ss:$12 sps:$4 sm:$0xff]  }
  0x13   : > { %232 = vrot.lane.b32.xlu0 %v818_v2, %s770_s18  ;;  %228 = vrot.lane.b32.xlu1 %v821_v3, %s770_s18 }
  0x17   : > { %215 = vrot.lane.b32.xlu0 %v813_v0, %s771_s19  ;;  %217 = vrot.lane.b32.xlu1 %v818_v2, %s771_s19 }
  0x1b   : > { %211 = vrot.lane.b32.xlu0 %v815_v1, %s771_s19  ;;  %213 = vrot.lane.b32.xlu1 %v821_v3, %s771_s19 }
  0x1f   : > { %200 = vrot.lane.b32.xlu0 %v813_v0, %s772_s20  ;;  %202 = vrot.lane.b32.xlu1 %v818_v2, %s772_s20 }
  0x23   : > { %196 = vrot.lane.b32.xlu0 %v815_v1, %s772_s20  ;;  %198 = vrot.lane.b32.xlu1 %v821_v3, %s772_s20 }
  0x27   : > { %290 = vrot.lane.b32.xlu0 %v813_v0, %s773_s21  ;;  %292 = vrot.lane.b32.xlu1 %v818_v2, %s773_s21 }
  0x2b   : > { %286 = vrot.lane.b32.xlu0 %v815_v1, %s773_s21  ;;  %288 = vrot.lane.b32.xlu1 %v821_v3, %s773_s21 }
  0x2f   : > { %275 = vrot.lane.b32.xlu0 %v813_v0, %s774_s22  ;;  %277 = vrot.lane.b32.xlu1 %v818_v2, %s774_s22 }
  0x33   : > { %271 = vrot.lane.b32.xlu0 %v815_v1, %s774_s22  ;;  %273 = vrot.lane.b32.xlu1 %v821_v3, %s774_s22 }
  0x37   : > { %260 = vrot.lane.b32.xlu0 %v813_v0, %s775_s23  ;;  %262 = vrot.lane.b32.xlu1 %v818_v2, %s775_s23 }
  0x3b   : > { %256 = vrot.lane.b32.xlu0 %v815_v1, %s775_s23  ;;  %258 = vrot.lane.b32.xlu1 %v821_v3, %s775_s23 }
  0x3f   : > { %245 = vrot.lane.b32.xlu0 %v813_v0, %s776_s24  ;;  %247 = vrot.lane.b32.xlu1 %v818_v2, %s776_s24 }
  0x43   : > { %305 = vrot.lane.b32.xlu0 %v813_v0, %s778_s25  ;;  %307 = vrot.lane.b32.xlu1 %v818_v2, %s778_s25 }
  0x47   : > { %241 = vrot.lane.b32.xlu0 %v815_v1, %s776_s24  ;;  %243 = vrot.lane.b32.xlu1 %v821_v3, %s776_s24 }
  0x4b   : > { %301 = vrot.lane.b32.xlu0 %v815_v1, %s778_s25  ;;  %303 = vrot.lane.b32.xlu1 %v821_v3, %s778_s25 }
  0x4f   : > { %330 = vperm.xlu0 %742, %v324_v6   ;;  %335 = vperm.xlu1 %743, %v325_v7  }
  0x53   : > { %345 = vperm.xlu0 %742, %v327_v8   ;;  %340 = vperm.xlu1 %743, %v326_v9  }
  0x81   : > { %v231_v10 = vpop.permute.xlu0 %230  ;;  %v227_v11 = vpop.permute.xlu1 %226 }
  0x85   : > { %v233_v12 = vpop.permute.xlu0 %232  ;;  %v229_v13 = vpop.permute.xlu1 %228 }
  0x86   : > { %385 = vmatprep.subr.bf16.mxu0 %v233_v12  ;;  %v236_v14 = vsel %vm234_vm0, %v231_v10, %v233_v12  ;;  %v235_v17 = vsel %vm234_vm0, %v227_v11, %v229_v13 }
  0x87   : > { %386 = vmatpush1.bf16.msra.mxu0 %v236_v14 }
  0x88   : > { %387 = vmatprep.subr.bf16.mxu0 %v229_v13 }
  0x89   : > { %v216_v15 = vpop.permute.xlu0 %215  ;;  %v218_v16 = vpop.permute.xlu1 %217 }
  0x8a   : > { %v221_v18 = vsel %vm219_vm1, %v216_v15, %v218_v16 }
  0x8b   : > { %388 = vmatpush1.bf16.msra.mxu0 %v235_v17 }
  0x8c   : > { %389 = vmatprep.subr.bf16.mxu0 %v218_v16 }
  0x8d   : > { %v212_v19 = vpop.permute.xlu0 %211  ;;  %v214_v20 = vpop.permute.xlu1 %213 }
  0x8e   : > { %v220_v21 = vsel %vm219_vm1, %v212_v19, %v214_v20 }
  0x8f   : > { %390 = vmatpush1.bf16.msra.mxu0 %v221_v18 }
  0x90   : > { %391 = vmatprep.subr.bf16.mxu0 %v214_v20 }
  0x91   : > { %v201_v22 = vpop.permute.xlu0 %200  ;;  %v203_v23 = vpop.permute.xlu1 %202 }
  0x92   : > { %v206_v24 = vsel %vm204_vm2, %v201_v22, %v203_v23 }
  0x93   : > { %392 = vmatpush1.bf16.msra.mxu0 %v220_v21 }
  0x94   : > { %393 = vmatprep.subr.bf16.mxu0 %v203_v23 }
  0x95   : > { %v197_v25 = vpop.permute.xlu0 %196  ;;  %v199_v26 = vpop.permute.xlu1 %198 }
  0x96   : > { %v205_v27 = vsel %vm204_vm2, %v197_v25, %v199_v26 }
  0x97   : > { %394 = vmatpush1.bf16.msra.mxu0 %v206_v24 }
  0x98   : > { %395 = vmatprep.subr.bf16.mxu0 %v199_v26 }
  0x99   : > { %v291_v28 = vpop.permute.xlu0 %290  ;;  %v293_v29 = vpop.permute.xlu1 %292 }
  0x9a   : > { %v296_v36 = vsel %vm294_vm3, %v291_v28, %v293_v29 }
  0x9b   : > { %396 = vmatpush1.bf16.msra.mxu0 %v205_v27 }
  0x9c   : > { %397 = vmatprep.subr.bf16.mxu0 %v818_v2 }
  0x9d   : > { %v287_v30 = vpop.permute.xlu0 %286  ;;  %v289_v31 = vpop.permute.xlu1 %288 }
  0x9e   : > { %v295_v39 = vsel %vm294_vm3, %v287_v30, %v289_v31 }
  0x9f   : > { %398 = vmatpush1.bf16.msra.mxu0 %v813_v0 }
  0xa0   : > { %399 = vmatprep.subr.bf16.mxu0 %v821_v3 }
  0xa1   : > { %v276_v32 = vpop.permute.xlu0 %275  ;;  %v278_v33 = vpop.permute.xlu1 %277 }
  0xa2   : > { %v281_v42 = vsel %vm279_vm4, %v276_v32, %v278_v33 }
  0xa3   : > { %400 = vmatpush1.bf16.msra.mxu0 %v815_v1 }
  0xa4   : > { %401 = vmatprep.subr.bf16.mxu0 %v293_v29 }
  0xa5   : > { %v272_v34 = vpop.permute.xlu0 %271  ;;  %v274_v35 = vpop.permute.xlu1 %273 }
  0xa6   : > { %v280_v45 = vsel %vm279_vm4, %v272_v34, %v274_v35 }
  0xa7   : > { %402 = vmatpush2.bf16.msra.mxu0 %v296_v36 }
  0xa8   : > { %403 = vmatprep.subr.bf16.mxu0 %v289_v31 }
  0xa9   : > { %v261_v37 = vpop.permute.xlu0 %260  ;;  %v263_v38 = vpop.permute.xlu1 %262 }
  0xaa   : > { %v266_v48 = vsel %vm264_vm5, %v261_v37, %v263_v38 }
  0xab   : > { %404 = vmatpush2.bf16.msra.mxu0 %v295_v39 }
  0xac   : > { %405 = vmatprep.subr.bf16.mxu0 %v278_v33 }
  0xad   : > { %v257_v40 = vpop.permute.xlu0 %256  ;;  %v259_v41 = vpop.permute.xlu1 %258 }
  0xae   : > { %v265_v52 = vsel %vm264_vm5, %v257_v40, %v259_v41 }
  0xaf   : > { %406 = vmatpush2.bf16.msra.mxu0 %v281_v42 }
  0xb0   : > { %407 = vmatprep.subr.bf16.mxu0 %v274_v35 }
  0xb1   : > { %v246_v43 = vpop.permute.xlu0 %245  ;;  %v248_v44 = vpop.permute.xlu1 %247 }
  0xb2   : > { %v251_v55 = vsel %vm249_vm7, %v246_v43, %v248_v44 }
  0xb3   : > { %408 = vmatpush2.bf16.msra.mxu0 %v280_v45 }
  0xb4   : > { %409 = vmatprep.subr.bf16.mxu0 %v263_v38 }
  0xb5   : > { %v306_v46 = vpop.permute.xlu0 %305  ;;  %v308_v47 = vpop.permute.xlu1 %307 }
  0xb6   : > { %450 = vmatprep.subr.bf16.mxu1 %v308_v47  ;;  %v311_v49 = vsel %vm309_vm6, %v306_v46, %v308_v47 }
  0xb7   : > { %410 = vmatpush2.bf16.msra.mxu0 %v266_v48  ;;  %451 = vmatpush1.bf16.msra.mxu1 %v311_v49 }
  0xb8   : > { %411 = vmatprep.subr.bf16.mxu0 %v259_v41 }
  0xb9   : > { %v242_v50 = vpop.permute.xlu0 %241  ;;  %v244_v51 = vpop.permute.xlu1 %243 }
  0xba   : > { %v250_v58 = vsel %vm249_vm7, %v242_v50, %v244_v51 }
  0xbb   : > { %412 = vmatpush2.bf16.msra.mxu0 %v265_v52 }
  0xbc   : > { %413 = vmatprep.subr.bf16.mxu0 %v248_v44 }
  0xbd   : > { %v302_v53 = vpop.permute.xlu0 %301  ;;  %v304_v54 = vpop.permute.xlu1 %303 }
  0xbe   : > { %452 = vmatprep.subr.bf16.mxu1 %v304_v54  ;;  %v310_v56 = vsel %vm309_vm6, %v302_v53, %v304_v54 }
  0xbf   : > { %414 = vmatpush2.bf16.msra.mxu0 %v251_v55  ;;  %453 = vmatpush1.bf16.msra.mxu1 %v310_v56 }
  0xc0   : > { %415 = vmatprep.subr.bf16.mxu0 %v244_v51 }
  0xc2   : > { %719 = vmatmul.mubr.msk.bf16.vlgmr.msra.gmra.mxu1 %vm378_vm8, %v750_v57 }
  0xc3   : > { %416 = vmatpush2.bf16.msra.mxu0 %v250_v58  ;;  %480 = vmatprep.mubr.bf16.mxu1 %v777_v4 }
  0xc6   : > { %418 = vmatmul.mubr.bf16.vlgmr.msra.gmra.mxu0 %v751_v59 }
  0xc7   : > { %427 = vmatprep.mubr.bf16.mxu0 %v754_v60 }
  0xca   : > { %720 = vmatmul.mubr.msk.bf16.gmra.mxu1 %vm378_vm8, %v756_v61  ;;  %v331_v1 = vpop.permute.xlu0 %330  ;;  %v336_v6 = vpop.permute.xlu1 %335 }
  0xce   : > { %428 = vmatmul.mubr.bf16.gmra.mxu0 %v757_v62  ;;  %v341_v19 = vpop.permute.xlu1 %340  ;;  %v346_v26 = vpop.permute.xlu0 %345 }
 0x182   : > { %v472_v63 = vpop.f32.mrf.mxu1 }
 0x184   : > { %v474_v0 = vpop.f32.mrf.mxu1 }
 0x186   : > { %v419_v2 = vpop.f32.mrf.mxu0  ;;  %v476_v5 = vpop.f32.mrf.mxu1 }
 0x187   : > { %v420_v3 = vadd.f32 %v419_v2, %v331_v1 }
 0x188   : > { %v421_v4 = vpop.f32.mrf.mxu0  ;;  %v478_v9 = vpop.f32.mrf.mxu1 }
 0x189   : > { %v473_v7 = vadd.f32 %v472_v63, %v420_v3  ;;  %v422_v8 = vadd.f32 %v421_v4, %v331_v1 }
 0x18a   : > { %v423_v10 = vpop.f32.mrf.mxu0  ;;  %v482_v14 = vpop.f32.mrf.mxu1 }
 0x18b   : > { %v491_v11 = vmax.f32 %v473_v7, 0.0  ;;  %v475_v12 = vadd.f32 %v474_v0, %v422_v8  ;;  %v424_v13 = vadd.f32 %v423_v10, %v336_v6 }
 0x18c   : > { %v425_v15 = vpop.f32.mrf.mxu0  ;;  %v484_v21 = vpop.f32.mrf.mxu1 }
 0x18d   : > { %v492_v16 = vmax.f32 %v475_v12, 0.0  ;;  %v477_v17 = vadd.f32 %v476_v5, %v424_v13  ;;  %v426_v18 = vadd.f32 %v425_v15, %v336_v6  ;;  %507 = vrot.lane.b32.xlu1 %v491_v11, %s772_s20 }
 0x18e   : > { %v429_v20 = vpop.f32.mrf.mxu0  ;;  %v486_v30 = vpop.f32.mrf.mxu1 }
 0x18f   : > { %v493_v22 = vmax.f32 %v477_v17, 0.0  ;;  %v479_v23 = vadd.f32 %v478_v9, %v426_v18  ;;  %v430_v24 = vadd.f32 %v429_v20, %v341_v19  ;;  %509 = vrot.lane.b32.xlu0 %v492_v16, %s772_s20 }
 0x190   : > { %v431_v25 = vpop.f32.mrf.mxu0  ;;  %v488_v39 = vpop.f32.mrf.mxu1 }
 0x191   : > { %v494_v27 = vmax.f32 %v479_v23, 0.0  ;;  %v483_v28 = vadd.f32 %v482_v14, %v430_v24  ;;  %v432_v29 = vadd.f32 %v431_v25, %v341_v19  ;;  %511 = vrot.lane.b32.xlu1 %v493_v22, %s772_s20 }
 0x192   : > { %v433_v31 = vpop.f32.mrf.mxu0 }
 0x193   : > { %v495_v32 = vmax.f32 %v483_v28, 0.0  ;;  %v485_v33 = vadd.f32 %v484_v21, %v432_v29  ;;  %v434_v34 = vadd.f32 %v433_v31, %v346_v26  ;;  %513 = vrot.lane.b32.xlu0 %v494_v27, %s772_s20 }
 0x194   : > { %v435_v35 = vpop.f32.mrf.mxu0 }
 0x195   : > { %v496_v36 = vmax.f32 %v485_v33, 0.0  ;;  %v487_v37 = vadd.f32 %v486_v30, %v434_v34  ;;  %v436_v38 = vadd.f32 %v435_v35, %v346_v26  ;;  %515 = vrot.lane.b32.xlu1 %v495_v32, %s772_s20 }
 0x197   : > { %v497_v40 = vmax.f32 %v487_v37, 0.0  ;;  %v489_v41 = vadd.f32 %v488_v39, %v436_v38  ;;  %517 = vrot.lane.b32.xlu0 %v496_v36, %s772_s20 }
 0x199   : > { %v498_v42 = vmax.f32 %v489_v41, 0.0  ;;  %519 = vrot.lane.b32.xlu1 %v497_v40, %s772_s20 }
 0x19b   : > { %521 = vrot.lane.b32.xlu0 %v498_v42, %s772_s20 }
 0x1ff   : > { %v508_v43 = vpop.permute.xlu1 %507 }
 0x201   : > { %v510_v44 = vpop.permute.xlu0 %509 }
 0x202   : > { %v537_v45 = vmax.f32 %v492_v16, %v510_v44  ;;  %v524_v46 = vsel %vm204_vm2, %v508_v43, %v510_v44 }
 0x203   : > { %v512_v47 = vpop.permute.xlu1 %511  ;;  %v536_v49 = vmax.f32 %v491_v11, %v524_v46 }
 0x204   : > { %554 = vrot.lane.b32.xlu1 %v537_v45, %s771_s19 }
 0x205   : > { %v514_v48 = vpop.permute.xlu0 %513 }
 0x206   : > { %v539_v50 = vmax.f32 %v494_v27, %v514_v48  ;;  %v525_v51 = vsel %vm204_vm2, %v512_v47, %v514_v48 }
 0x207   : > { %v516_v52 = vpop.permute.xlu1 %515  ;;  %v538_v54 = vmax.f32 %v493_v22, %v525_v51 }
 0x208   : > { %558 = vrot.lane.b32.xlu0 %v539_v50, %s771_s19  ;;  %552 = vrot.lane.b32.xlu1 %v536_v49, %s771_s19 }
 0x209   : > { %v518_v53 = vpop.permute.xlu0 %517 }
 0x20a   : > { %v541_v55 = vmax.f32 %v496_v36, %v518_v53  ;;  %v526_v56 = vsel %vm204_vm2, %v516_v52, %v518_v53 }
 0x20b   : > { %v540_v58 = vmax.f32 %v495_v32, %v526_v56  ;;  %v520_v59 = vpop.permute.xlu1 %519 }
 0x20c   : > { %562 = vrot.lane.b32.xlu1 %v541_v55, %s771_s19  ;;  %556 = vrot.lane.b32.xlu0 %v538_v54, %s771_s19 }
 0x20d   : > { %v522_v57 = vpop.permute.xlu0 %521 }
 0x20e   : > { %v543_v60 = vmax.f32 %v498_v42, %v522_v57  ;;  %v527_v61 = vsel %vm204_vm2, %v520_v59, %v522_v57 }
 0x20f   : > { %v542_v62 = vmax.f32 %v497_v40, %v527_v61 }
 0x210   : > { %566 = vrot.lane.b32.xlu1 %v543_v60, %s771_s19  ;;  %560 = vrot.lane.b32.xlu0 %v540_v58, %s771_s19 }
 0x214   : > { %564 = vrot.lane.b32.xlu0 %v542_v62, %s771_s19  ;;  %s724_s19 = sshll.u32 %s949_s13, 6 }
 0x215   : > { %s170_s24 = scalar_lea.vmem %s947_s3, %s724_s19 }
 0x276   : > { %v555_v63 = vpop.permute.xlu1 %554 }
 0x277   : > { %v582_v2 = vmax.f32 %v537_v45, %v555_v63 }
 0x279   : > { %v590_v7 = vmul.f32 %v582_v2, %v582_v2 }
 0x27a   : > { %v559_v0 = vpop.permute.xlu0 %558  ;;  %v553_v1 = vpop.permute.xlu1 %552 }
 0x27b   : > { %v584_v3 = vmax.f32 %v539_v50, %v559_v0  ;;  %v569_v8 = vsel %vm219_vm1, %v553_v1, %v555_v63  ;;  %v607_v17 = vsel %vm606_vm9, %v590_v7, 0.0 }
 0x27c   : > { %v581_v14 = vmax.f32 %v536_v49, %v569_v8 }
 0x27d   : > { %v592_v5 = vmul.f32 %v584_v3, %v584_v3 }
 0x27e   : > { %v557_v6 = vpop.permute.xlu0 %556  ;;  %v563_v4 = vpop.permute.xlu1 %562  ;;  %v589_v25 = vmul.f32 %v581_v14, %v581_v14 }
 0x27f   : > { %v570_v9 = vsel %vm219_vm1, %v557_v6, %v559_v0  ;;  %v586_v10 = vmax.f32 %v541_v55, %v563_v4  ;;  %v608_v12 = vsel %vm606_vm9, %v592_v5, 0.0 }
 0x280   : > { %v583_v11 = vmax.f32 %v538_v54, %v570_v9  ;;  %v609_v21 = vadd.f32 %v608_v12, %v607_v17 }
 0x281   : > { %v594_v13 = vmul.f32 %v586_v10, %v586_v10 }
 0x282   : > { %v561_v15 = vpop.permute.xlu0 %560  ;;  %v567_v16 = vpop.permute.xlu1 %566  ;;  %v591_v22 = vmul.f32 %v583_v11, %v583_v11 }
 0x283   : > { %v610_v18 = vsel %vm606_vm9, %v594_v13, 0.0  ;;  %v571_v19 = vsel %vm219_vm1, %v561_v15, %v563_v4  ;;  %v588_v20 = vmax.f32 %v543_v60, %v567_v16 }
 0x284   : > { %v585_v23 = vmax.f32 %v540_v58, %v571_v19  ;;  %v611_v26 = vadd.f32 %v610_v18, %v609_v21  ;;  %v597_v31 = vadd.f32 %v591_v22, %v589_v25 }
 0x285   : > { %v596_v24 = vmul.f32 %v588_v20, %v588_v20 }
 0x286   : > { %v593_v27 = vmul.f32 %v585_v23, %v585_v23  ;;  %v565_v28 = vpop.permute.xlu0 %564 }
 0x287   : > { %v612_v29 = vsel %vm606_vm9, %v596_v24, 0.0  ;;  %v572_v30 = vsel %vm219_vm1, %v565_v28, %v567_v16 }
 0x288   : > { %v613_v32 = vadd.f32 %v612_v29, %v611_v26  ;;  %v587_v33 = vmax.f32 %v542_v62, %v572_v30  ;;  %v598_v34 = vadd.f32 %v597_v31, %v593_v27 }
 0x28a   : > { %v614_v35 = vrot.slane %v613_v32, 4  ;;  %v595_v36 = vmul.f32 %v587_v33, %v587_v33 }
 0x28c   : > { %v615_v37 = vadd.f32 %v614_v35, %v613_v32  ;;  %v599_v38 = vadd.f32 %v598_v34, %v595_v36 }
 0x28e   : > { %v616_v39 = vrot.slane %v615_v37, 2  ;;  %v600_v40 = vrot.slane %v599_v38, 4 }
 0x290   : > { %v617_v41 = vadd.f32 %v616_v39, %v615_v37  ;;  %v601_v42 = vadd.f32 %v600_v40, %v599_v38 }
 0x292   : > { %v618_v43 = vrot.slane %v617_v41, 1  ;;  %v602_v44 = vrot.slane %v601_v42, 2 }
 0x294   : > { %v619_v45 = vadd.f32 %v618_v43, %v617_v41  ;;  %v603_v46 = vadd.f32 %v602_v44, %v601_v42 }
 0x296   : > { %v621_v47 = vmax.f32 %v619_v45, 1e-24  ;;  %v604_v48 = vrot.slane %v603_v46, 1 }
 0x298   : > { %758 = vrsqrt.f32 %v621_v47  ;;  %v605_v49 = vadd.f32 %v604_v48, %v603_v46 }
 0x29a   : > { %v620_v50 = vmax.f32 %v605_v49, 1e-24 }
 0x29c   : > { %760 = vrsqrt.f32 %v620_v50 }
 0x2a5   : > { %v759_v51 = vpop.eup %758 }
 0x2a6   : > { %v625_v52 = vmul.f32 %v759_v51, %v582_v2  ;;  %v627_v53 = vmul.f32 %v759_v51, %v584_v3  ;;  %v629_v54 = vmul.f32 %v759_v51, %v586_v10  ;;  %v631_v55 = vmul.f32 %v759_v51, %v588_v20 }
 0x2a8   : > { %v632_v56 = vsel %vm606_vm9, %v625_v52, 0.0  ;;  %v633_v57 = vsel %vm606_vm9, %v627_v53, 0.0  ;;  %v634_v58 = vsel %vm606_vm9, %v629_v54, 0.0  ;;  %v635_v59 = vsel %vm606_vm9, %v631_v55, 0.0 }
 0x2a9   : > { %v761_v60 = vpop.eup %760  ;;  %638 = vst.msk [vmem:[%s170_s24 + $0x8] sm:$0xff] %vm637_vm10, %v632_v56  ;;  %640 = vst.msk [vmem:[%s170_s24 + $0x18] sm:$0xff] %vm637_vm10, %v633_v57 }
 0x2aa   : > { %642 = vst.msk [vmem:[%s170_s24 + $0x28] sm:$0xff] %vm637_vm10, %v634_v58  ;;  %644 = vst.msk [vmem:[%s170_s24 + $0x38] sm:$0xff] %vm637_vm10, %v635_v59  ;;  %v624_v61 = vmul.f32 %v761_v60, %v581_v14  ;;  %v626_v62 = vmul.f32 %v761_v60, %v583_v11  ;;  %v628_v63 = vmul.f32 %v761_v60, %v585_v23 }
 0x2ab   : > { %v630_v0 = vmul.f32 %v761_v60, %v587_v33 }
 0x2ac   : > { %636 = vst [vmem:[%s170_s24] sm:$0xff] %v624_v61  ;;  %639 = vst [vmem:[%s170_s24 + $0x10] sm:$0xff] %v626_v62 }
 0x2ad   : > { %641 = vst [vmem:[%s170_s24 + $0x20] sm:$0xff] %v628_v63  ;;  %643 = vst [vmem:[%s170_s24 + $0x30] sm:$0xff] %v630_v0 }
 0x2ae PF: > { %s13_s12 = sadd.s32 1, %s768_s12  }
 0x2af   : > { %p10_p4 = scmp.ge.s32.totalorder %s13_s12, 4  }
 0x2b1   :  { %12 = sbr.rel (!%p10_p4) target bundleno = 1 (0x1), region = 62 }

</bundles_post_ra>
